<compile_context>
chip_gen: v5e
topology: v5e:2x2
jax: 0.10.0
libtpu: 0.0.40
codegen_flags: <defaults>
</compile_context>

<pallas_src>
import math

import jax
import jax.numpy as jnp
from jax.experimental import pallas as pl
from jax.experimental.pallas import tpu as pltpu

# CustomLoss.__init__ default weights=[1, 1]
W0, W1 = 1.0, 1.0
# CFG constants baked in deterministically (no checkpoint / CSV loading)
ALPHA, GAMMA = 1.0, 2.0          # GAMMA == 2 is exploited as a plain square in-kernel
SMOOTHING = [0.0, 0.0, 0.01, 0.0, 0.0, 0.0, 0.01, 0.0, 0.0, 0.01, 0.0]
NUM_CLASSES = 11

LANES = 128
ACC_ROWS_TARGET = 64                   # widen the accumulator to break the serial VPU add chain
MAX_TILE_BYTES = 4 * 1024 * 1024       # per-input, per-step tile budget (byte-based, dtype-aware)
VMEM_LIMIT_BYTES = 48 * 1024 * 1024    # fits v7x (64 MiB physical) and v5e/v6e (128 MiB)


def _cdiv(a, b):
    return -(-a // b)


def _round_up(a, b):
    return _cdiv(a, b) * b


def _num_tensorcores():
    """2 on chips exposing 2 TensorCores per device (v4/v5p megacore, v7x); else 1 (v5e/v6e)."""
    try:
        kind = jax.devices()[0].device_kind.lower()
    except Exception:
        return 1
    return 2 if any(tag in kind for tag in ("v4", "v5p", "v7", "tpu7")) else 1


@jax.jit
def custom_loss(teacher_features, features, y_pred, labels):
    """Equivalent of CustomLoss(weights=[1, 1]).forward(...). Returns a scalar."""
    # Stream f32 / bf16 features in their native dtype; cast anything else to f32.
    feat_dtype = teacher_features.dtype
    if (feat_dtype != features.dtype
            or feat_dtype not in (jnp.dtype(jnp.float32), jnp.dtype(jnp.bfloat16))):
        feat_dtype = jnp.dtype(jnp.float32)
    tf = teacher_features.astype(feat_dtype)
    f = features.astype(feat_dtype)
    assert tf.shape == f.shape

    n_feat = int(tf.size)
    itemsize = jnp.dtype(feat_dtype).itemsize
    sub = 8 * (4 // itemsize)                    # sublane granularity: 8 for f32, 16 for bf16
    is_bf16 = feat_dtype == jnp.dtype(jnp.bfloat16)

    # ---- zero-copy lane-dense view (rows, 128); sub-128 remainder summed in plain JAX ----
    tf_flat = jnp.reshape(tf, (-1,))
    f_flat = jnp.reshape(f, (-1,))
    rows_valid = n_feat // LANES
    tail = n_feat - rows_valid * LANES

    if tail:
        a_t = jax.lax.slice(tf_flat, (rows_valid * LANES,), (n_feat,)).astype(jnp.float32)
        b_t = jax.lax.slice(f_flat, (rows_valid * LANES,), (n_feat,)).astype(jnp.float32)
        tail_sqsum = jnp.sum((a_t - b_t) ** 2)   # < 128 elements -> negligible
    else:
        tail_sqsum = jnp.float32(0.0)

    if rows_valid == 0:
        # Degenerate (< 128 elements): whole MSE handled by the tail path; feed an all-zero
        # slab so the kernel contributes exactly 0 and still computes the focal term.
        tf2d = jnp.zeros((sub, LANES), feat_dtype)
        f2d = jnp.zeros((sub, LANES), feat_dtype)
        rows2d = sub
    elif tail:
        # TODO(synk): non-multiple-of-128 sizes pay one slice copy of the main body; a manual
        #             DMA (memory_space=pl.ANY) path would make this zero-copy as well.
        tf2d = jax.lax.slice(tf_flat, (0,), (rows_valid * LANES,)).reshape(rows_valid, LANES)
        f2d = jax.lax.slice(f_flat, (0,), (rows_valid * LANES,)).reshape(rows_valid, LANES)
        rows2d = rows_valid
    else:
        tf2d = tf_flat.reshape(rows_valid, LANES)   # contiguous reshape -> bitcast, no HBM copy
        f2d = f_flat.reshape(rows_valid, LANES)
        rows2d = rows_valid

    # ---- tiling: byte-based tile budget, cdiv grid, no zero padding anywhere ----
    n_cores = _num_tensorcores()
    max_tile_rows = MAX_TILE_BYTES // (LANES * itemsize)        # 8192 f32 / 16384 bf16
    tile_rows = min(max_tile_rows, _round_up(_cdiv(rows2d, n_cores), sub))
    kt = _cdiv(rows2d, tile_rows)               # total row-tiles; the last one may be ragged
    k_per_core = _cdiv(kt, n_cores)             # per-core steps; excess steps are fully masked
    acc_rows = math.gcd(tile_rows, ACC_ROWS_TARGET)   # accumulator height (multiple of sublane)

    B = y_pred.shape[0]
    yp = y_pred.astype(jnp.float32)
    lb = labels.astype(jnp.float32)
    assert yp.shape == (B, NUM_CLASSES) and lb.shape == yp.shape

    def kernel(tf_ref, f_ref, yp_ref, lb_ref, mse_out_ref, cls_out_ref, acc_ref):
        c = pl.program_id(0)
        k = pl.program_id(1)
        k_last = pl.num_programs(1) - 1

        # ---- init per-core accumulator ----
        @pl.when(k == 0)
        def _():
            acc_ref[...] = jnp.zeros_like(acc_ref)

        g = c * k_per_core + k                 # global (unclamped) row-tile index
        row_start = g * tile_rows

        # ---- squared differences (VPU-only, hidden under the tile DMA) ----
        if is_bf16:
            d = (tf_ref[...] - f_ref[...]).astype(jnp.float32)   # bf16 sub, one upcast
        else:
            d = tf_ref[...].astype(jnp.float32) - f_ref[...].astype(jnp.float32)
        sq = d * d

        # hot path: fully-valid tile, mask-free, wide (acc_rows,128) accumulation
        @pl.when(row_start + tile_rows <= rows2d)
        def _():
            acc_ref[...] += jnp.sum(sq.reshape(-1, acc_rows, LANES), axis=0)

        # cold path: ragged last tile / excess per-core step -> row-mask before accumulating
        @pl.when(row_start + tile_rows > rows2d)
        def _():
            valid = rows2d - row_start          # may be <= 0 for excess steps (fully masked)
            rid = jax.lax.broadcasted_iota(jnp.int32, (tile_rows, LANES), 0)
            msq = jnp.where(rid < valid, sq, 0.0)
            acc_ref[...] += jnp.sum(msq.reshape(-1, acc_rows, LANES), axis=0)

        # ---- final per-core reduce: the single cross-lane/sublane XLU reduction ----
        @pl.when(k == k_last)
        def _():
            mse_out_ref[...] = jnp.full((8, LANES), jnp.sum(acc_ref[...]), dtype=jnp.float32)

        # ---- classification loss: smooth focal with logits, computed exactly once ----
        @pl.when((c == 0) & (k == k_last))
        def _():
            x = yp_ref[...].astype(jnp.float32)      # (B, 11) logits
            t = lb_ref[...].astype(jnp.float32)      # (B, 11) binary targets
            # per-class smoothing baked in as a constant (no extra input / DMA)
            lane = jax.lax.broadcasted_iota(jnp.int32, (1, NUM_CLASSES), 1)
            s = jnp.zeros((1, NUM_CLASSES), jnp.float32)
            for idx, val in enumerate(SMOOTHING):
                if val != 0.0:
                    s = jnp.where(lane == idx, jnp.float32(val), s)
            ts = t * (1.0 - s) + 0.5 * s             # label smoothing
            # binary_cross_entropy_with_logits (reduction='none'), numerically stable form
            bce = jnp.maximum(x, 0.0) - x * ts + jnp.log1p(jnp.exp(-jnp.abs(x)))
            pt = jnp.exp(-bce)
            one_m_pt = 1.0 - pt
            focal = ALPHA * (one_m_pt * one_m_pt) * bce      # GAMMA == 2 -> square, not pow
            n_cls = x.shape[0] * x.shape[1]
            cls_out_ref[...] = jnp.full((8, LANES), jnp.sum(focal) * (1.0 / n_cls),
                                        dtype=jnp.float32)
        # Note: cls block for cores != 0 is intentionally left unwritten (never read).

    # Block index is clamped to the last real tile; excess steps re-read it but are fully
    # masked in-kernel, so there is no double counting and no out-of-bounds block index.
    feat_spec = pl.BlockSpec(
        (tile_rows, LANES),
        lambda c, k: (jnp.minimum(c * k_per_core + k, kt - 1), 0))
    cls_in_spec = pl.BlockSpec((B, NUM_CLASSES), lambda c, k: (0, 0))     # resident, DMA'd once
    part_spec = pl.BlockSpec((None, 8, LANES), lambda c, k: (c, 0, 0))    # per-core partial row

    mse_parts, cls_parts = pl.pallas_call(
        kernel,
        out_shape=(jax.ShapeDtypeStruct((n_cores, 8, LANES), jnp.float32),
                   jax.ShapeDtypeStruct((n_cores, 8, LANES), jnp.float32)),
        grid_spec=pltpu.PrefetchScalarGridSpec(
            num_scalar_prefetch=0,
            grid=(n_cores, k_per_core),
            in_specs=[feat_spec, feat_spec, cls_in_spec, cls_in_spec],
            out_specs=[part_spec, part_spec],
            scratch_shapes=[pltpu.VMEM((acc_rows, LANES), jnp.float32)],
        ),
        compiler_params=pltpu.CompilerParams(
            dimension_semantics=("parallel", "arbitrary"),
            vmem_limit_bytes=VMEM_LIMIT_BYTES,
        ),
    )(tf2d, f2d, yp, lb)

    mse = (jnp.sum(mse_parts[:, 0, 0]) + tail_sqsum) * (1.0 / n_feat)
    cls = cls_parts[0, 0, 0]
    return W0 * mse + W1 * cls


def _reference_loss(teacher_features, features, y_pred, labels):
    """Pure-JAX reference mirroring the PyTorch module, for a sanity check."""
    a = teacher_features.reshape(-1).astype(jnp.float32)
    b = features.reshape(-1).astype(jnp.float32)
    mse = jnp.mean((a - b) ** 2)
    s = jnp.asarray(SMOOTHING, jnp.float32)[None, :]
    x = y_pred.astype(jnp.float32)
    t = labels.astype(jnp.float32) * (1.0 - s) + 0.5 * s
    bce = jnp.maximum(x, 0.0) - x * t + jnp.log1p(jnp.exp(-jnp.abs(x)))
    focal = ALPHA * (1.0 - jnp.exp(-bce)) ** GAMMA * bce
    cls = jnp.mean(jnp.mean(focal, axis=0))
    return W0 * mse + W1 * cls


if __name__ == "__main__":
    key = jax.random.PRNGKey(0)
    k1, k2, k3, k4 = jax.random.split(key, 4)

    B, C, H, W = 2, 4, 16, 16           # small NFNet-like feature maps (NCHW)
    teacher_features = jax.random.normal(k1, (B, C, H, W), dtype=jnp.float32)
    features = teacher_features + 0.1 * jax.random.normal(k2, (B, C, H, W), dtype=jnp.float32)
    y_pred = jax.random.normal(k3, (B, NUM_CLASSES), dtype=jnp.float32)
    labels = jax.random.bernoulli(k4, p=0.3, shape=(B, NUM_CLASSES)).astype(jnp.float32)

    loss = custom_loss(teacher_features, features, y_pred, labels)
    jax.block_until_ready(loss)

    ref = _reference_loss(teacher_features, features, y_pred, labels)
    assert jnp.allclose(loss, ref, atol=1e-5, rtol=1e-5), (loss, ref)

    print("KERNEL_OK")
</pallas_src>

<mosaic_0001>
module attributes {stable_mosaic.version = 11 : i64} {
  func.func @kernel(%arg0: i32, %arg1: i32, %arg2: memref<16x128xf32, #tpu.memory_space<vmem>>, %arg3: memref<16x128xf32, #tpu.memory_space<vmem>>, %arg4: memref<2x11xf32, #tpu.memory_space<vmem>>, %arg5: memref<2x11xf32, #tpu.memory_space<vmem>>, %arg6: memref<1x8x128xf32, #tpu.memory_space<vmem>>, %arg7: memref<1x8x128xf32, #tpu.memory_space<vmem>>, %arg8: memref<16x128xf32, #tpu.memory_space<vmem>>) attributes {dimension_semantics = [#tpu.dimension_semantics<parallel>, #tpu.dimension_semantics<arbitrary>], iteration_bounds = array<i64: 1, 1>, scalar_prefetch = 0 : i64, scratch_operands = 1 : i64, tpu.core_type = #tpu.core_type<tc>, window_params = [{transform_indices = @transform_0, window_bounds = array<i64: 16, 128>}, {transform_indices = @transform_1, window_bounds = array<i64: 16, 128>}, {pipeline_mode = #tpu.pipeline_mode<synchronous>, transform_indices = @transform_2, window_bounds = array<i64: 2, 11>}, {pipeline_mode = #tpu.pipeline_mode<synchronous>, transform_indices = @transform_3, window_bounds = array<i64: 2, 11>}, {transform_indices = @transform_4, window_bounds = array<i64: 1, 8, 128>}, {transform_indices = @transform_5, window_bounds = array<i64: 1, 8, 128>}]} {
    %c0_i32 = arith.constant 0 : i32
    %0 = arith.cmpi eq, %arg1, %c0_i32 : i32
    %1 = arith.extui %0 : i1 to i32
    %c0_i32_0 = arith.constant 0 : i32
    %2 = arith.cmpi ne, %1, %c0_i32_0 : i32
    scf.if %2 {
      %cst = arith.constant 0.000000e+00 : f32
      %26 = vector.broadcast %cst : f32 to vector<16x128xf32>
      %c0_15 = arith.constant 0 : index
      %c0_16 = arith.constant 0 : index
      %27 = vector.load %arg8[%c0_15, %c0_16] : memref<16x128xf32, #tpu.memory_space<vmem>>, vector<16x128xf32>
      tpu.vector_store %arg8[%c0_15, %c0_16], %26 {strides = array<i32>} : memref<16x128xf32, #tpu.memory_space<vmem>>, vector<16x128xf32>,
    } else {
    }
    %c1_i32 = arith.constant 1 : i32
    %3 = arith.muli %arg0, %c1_i32 : i32
    %4 = arith.addi %3, %arg1 : i32
    %c16_i32 = arith.constant 16 : i32
    %5 = arith.muli %4, %c16_i32 : i32
    %c0 = arith.constant 0 : index
    %c0_1 = arith.constant 0 : index
    %6 = vector.load %arg2[%c0, %c0_1] : memref<16x128xf32, #tpu.memory_space<vmem>>, vector<16x128xf32>
    %c0_2 = arith.constant 0 : index
    %c0_3 = arith.constant 0 : index
    %7 = vector.load %arg3[%c0_2, %c0_3] : memref<16x128xf32, #tpu.memory_space<vmem>>, vector<16x128xf32>
    %8 = arith.subf %6, %7 : vector<16x128xf32>
    %9 = arith.mulf %8, %8 : vector<16x128xf32>
    %c16_i32_4 = arith.constant 16 : i32
    %10 = arith.addi %5, %c16_i32_4 : i32
    %c16_i32_5 = arith.constant 16 : i32
    %11 = arith.cmpi sle, %10, %c16_i32_5 : i32
    %12 = arith.extui %11 : i1 to i32
    %c0_i32_6 = arith.constant 0 : i32
    %13 = arith.cmpi ne, %12, %c0_i32_6 : i32
    scf.if %13 {
      %c0_15 = arith.constant 0 : index
      %c0_16 = arith.constant 0 : index
      %26 = vector.load %arg8[%c0_15, %c0_16] : memref<16x128xf32, #tpu.memory_space<vmem>>, vector<16x128xf32>
      %27 = vector.shape_cast %9 : vector<16x128xf32> to vector<1x16x128xf32>
      %cst = arith.constant dense<0.000000e+00> : vector<16x128xf32>
      %28 = vector.multi_reduction <add>, %27, %cst [0] : vector<1x16x128xf32> to vector<16x128xf32>
      %29 = arith.addf %26, %28 : vector<16x128xf32>
      %c0_17 = arith.constant 0 : index
      %c0_18 = arith.constant 0 : index
      %30 = vector.load %arg8[%c0_17, %c0_18] : memref<16x128xf32, #tpu.memory_space<vmem>>, vector<16x128xf32>
      tpu.vector_store %arg8[%c0_17, %c0_18], %29 {strides = array<i32>} : memref<16x128xf32, #tpu.memory_space<vmem>>, vector<16x128xf32>,
    } else {
    }
    %c16_i32_7 = arith.constant 16 : i32
    %14 = arith.addi %5, %c16_i32_7 : i32
    %c16_i32_8 = arith.constant 16 : i32
    %15 = arith.cmpi sgt, %14, %c16_i32_8 : i32
    %16 = arith.extui %15 : i1 to i32
    %c0_i32_9 = arith.constant 0 : i32
    %17 = arith.cmpi ne, %16, %c0_i32_9 : i32
    scf.if %17 {
      %c16_i32_15 = arith.constant 16 : i32
      %26 = arith.subi %c16_i32_15, %5 : i32
      %27 = tpu.iota {dimensions = array<i32: 0>} : vector<16x128xi32>
      %28 = vector.broadcast %26 : i32 to vector<16x128xi32>
      %29 = arith.cmpi slt, %27, %28 : vector<16x128xi32>
      %cst = arith.constant 0.000000e+00 : f32
      %30 = vector.broadcast %cst : f32 to vector<16x128xf32>
      %31 = arith.select %29, %9, %30 : vector<16x128xi1>, vector<16x128xf32>
      %c0_16 = arith.constant 0 : index
      %c0_17 = arith.constant 0 : index
      %32 = vector.load %arg8[%c0_16, %c0_17] : memref<16x128xf32, #tpu.memory_space<vmem>>, vector<16x128xf32>
      %33 = vector.shape_cast %31 : vector<16x128xf32> to vector<1x16x128xf32>
      %cst_18 = arith.constant dense<0.000000e+00> : vector<16x128xf32>
      %34 = vector.multi_reduction <add>, %33, %cst_18 [0] : vector<1x16x128xf32> to vector<16x128xf32>
      %35 = arith.addf %32, %34 : vector<16x128xf32>
      %c0_19 = arith.constant 0 : index
      %c0_20 = arith.constant 0 : index
      %36 = vector.load %arg8[%c0_19, %c0_20] : memref<16x128xf32, #tpu.memory_space<vmem>>, vector<16x128xf32>
      tpu.vector_store %arg8[%c0_19, %c0_20], %35 {strides = array<i32>} : memref<16x128xf32, #tpu.memory_space<vmem>>, vector<16x128xf32>,
    } else {
    }
    %c0_i32_10 = arith.constant 0 : i32
    %18 = arith.cmpi eq, %arg1, %c0_i32_10 : i32
    %19 = arith.extui %18 : i1 to i32
    %c0_i32_11 = arith.constant 0 : i32
    %20 = arith.cmpi ne, %19, %c0_i32_11 : i32
    scf.if %20 {
      %c0_15 = arith.constant 0 : index
      %c0_16 = arith.constant 0 : index
      %26 = vector.load %arg8[%c0_15, %c0_16] : memref<16x128xf32, #tpu.memory_space<vmem>>, vector<16x128xf32>
      %27 = vector.shape_cast %26 : vector<16x128xf32> to vector<1x16x128xf32>
      %cst = arith.constant dense<0.000000e+00> : vector<1xf32>
      %28 = vector.multi_reduction <add>, %27, %cst [1, 2] : vector<1x16x128xf32> to vector<1xf32>
      %29 = vector.shape_cast %28 : vector<1xf32> to vector<1x1x1xf32>
      %30 = vector.extract %29[0, 0, 0] : f32 from vector<1x1x1xf32>
      %31 = vector.broadcast %30 : f32 to vector<8x128xf32>
      %c0_17 = arith.constant 0 : index
      %c0_18 = arith.constant 0 : index
      %c0_19 = arith.constant 0 : index
      %32 = vector.load %arg6[%c0_17, %c0_18, %c0_19] : memref<1x8x128xf32, #tpu.memory_space<vmem>>, vector<1x8x128xf32>
      %33 = vector.shape_cast %32 : vector<1x8x128xf32> to vector<8x128xf32>
      %34 = vector.shape_cast %31 : vector<8x128xf32> to vector<1x8x128xf32>
      tpu.vector_store %arg6[%c0_17, %c0_18, %c0_19], %34 {strides = array<i32>} : memref<1x8x128xf32, #tpu.memory_space<vmem>>, vector<1x8x128xf32>,
    } else {
    }
    %c0_i32_12 = arith.constant 0 : i32
    %21 = arith.cmpi eq, %arg0, %c0_i32_12 : i32
    %c0_i32_13 = arith.constant 0 : i32
    %22 = arith.cmpi eq, %arg1, %c0_i32_13 : i32
    %23 = arith.andi %21, %22 : i1
    %24 = arith.extui %23 : i1 to i32
    %c0_i32_14 = arith.constant 0 : i32
    %25 = arith.cmpi ne, %24, %c0_i32_14 : i32
    scf.if %25 {
      %c0_15 = arith.constant 0 : index
      %c0_16 = arith.constant 0 : index
      %26 = vector.load %arg4[%c0_15, %c0_16] : memref<2x11xf32, #tpu.memory_space<vmem>>, vector<2x11xf32>
      %c0_17 = arith.constant 0 : index
      %c0_18 = arith.constant 0 : index
      %27 = vector.load %arg5[%c0_17, %c0_18] : memref<2x11xf32, #tpu.memory_space<vmem>>, vector<2x11xf32>
      %28 = tpu.iota {dimensions = array<i32: 1>} : vector<1x11xi32>
      %cst = arith.constant 0.000000e+00 : f32
      %29 = vector.broadcast %cst : f32 to vector<1x11xf32>
      %c2_i32 = arith.constant 2 : i32
      %30 = vector.broadcast %c2_i32 : i32 to vector<1x11xi32>
      %31 = arith.cmpi eq, %28, %30 : vector<1x11xi32>
      %cst_19 = arith.constant 0.00999999977 : f32
      %32 = vector.broadcast %cst_19 : f32 to vector<1x11xf32>
      %33 = arith.select %31, %32, %29 : vector<1x11xi1>, vector<1x11xf32>
      %c6_i32 = arith.constant 6 : i32
      %34 = vector.broadcast %c6_i32 : i32 to vector<1x11xi32>
      %35 = arith.cmpi eq, %28, %34 : vector<1x11xi32>
      %cst_20 = arith.constant 0.00999999977 : f32
      %36 = vector.broadcast %cst_20 : f32 to vector<1x11xf32>
      %37 = arith.select %35, %36, %33 : vector<1x11xi1>, vector<1x11xf32>
      %c9_i32 = arith.constant 9 : i32
      %38 = vector.broadcast %c9_i32 : i32 to vector<1x11xi32>
      %39 = arith.cmpi eq, %28, %38 : vector<1x11xi32>
      %cst_21 = arith.constant 0.00999999977 : f32
      %40 = vector.broadcast %cst_21 : f32 to vector<1x11xf32>
      %41 = arith.select %39, %40, %37 : vector<1x11xi1>, vector<1x11xf32>
      %cst_22 = arith.constant 1.000000e+00 : f32
      %42 = vector.broadcast %cst_22 : f32 to vector<1x11xf32>
      %43 = arith.subf %42, %41 : vector<1x11xf32>
      %44 = vector.broadcast %43 : vector<1x11xf32> to vector<2x11xf32>
      %45 = arith.mulf %27, %44 : vector<2x11xf32>
      %cst_23 = arith.constant 5.000000e-01 : f32
      %46 = vector.broadcast %cst_23 : f32 to vector<1x11xf32>
      %47 = arith.mulf %46, %41 : vector<1x11xf32>
      %48 = vector.broadcast %47 : vector<1x11xf32> to vector<2x11xf32>
      %49 = arith.addf %45, %48 : vector<2x11xf32>
      %cst_24 = arith.constant 0.000000e+00 : f32
      %50 = vector.broadcast %cst_24 : f32 to vector<2x11xf32>
      %51 = arith.maximumf %26, %50 : vector<2x11xf32>
      %52 = arith.mulf %26, %49 : vector<2x11xf32>
      %53 = arith.subf %51, %52 : vector<2x11xf32>
      %54 = math.absf %26 : vector<2x11xf32>
      %cst_25 = arith.constant 0.000000e+00 : f32
      %55 = vector.broadcast %cst_25 : f32 to vector<2x11xf32>
      %56 = arith.subf %55, %54 : vector<2x11xf32>
      %57 = math.exp %56 : vector<2x11xf32>
      %58 = math.log1p %57 : vector<2x11xf32>
      %59 = arith.addf %53, %58 : vector<2x11xf32>
      %cst_26 = arith.constant 0.000000e+00 : f32
      %60 = vector.broadcast %cst_26 : f32 to vector<2x11xf32>
      %61 = arith.subf %60, %59 : vector<2x11xf32>
      %62 = math.exp %61 : vector<2x11xf32>
      %cst_27 = arith.constant 1.000000e+00 : f32
      %63 = vector.broadcast %cst_27 : f32 to vector<2x11xf32>
      %64 = arith.subf %63, %62 : vector<2x11xf32>
      %65 = arith.mulf %64, %64 : vector<2x11xf32>
      %cst_28 = arith.constant 1.000000e+00 : f32
      %66 = vector.broadcast %cst_28 : f32 to vector<2x11xf32>
      %67 = arith.mulf %66, %65 : vector<2x11xf32>
      %68 = arith.mulf %67, %59 : vector<2x11xf32>
      %69 = vector.shape_cast %68 : vector<2x11xf32> to vector<1x2x11xf32>
      %cst_29 = arith.constant dense<0.000000e+00> : vector<1xf32>
      %70 = vector.multi_reduction <add>, %69, %cst_29 [1, 2] : vector<1x2x11xf32> to vector<1xf32>
      %71 = vector.shape_cast %70 : vector<1xf32> to vector<1x1x1xf32>
      %72 = vector.extract %71[0, 0, 0] : f32 from vector<1x1x1xf32>
      %cst_30 = arith.constant 0.0454545468 : f32
      %73 = arith.mulf %72, %cst_30 : f32
      %74 = vector.broadcast %73 : f32 to vector<8x128xf32>
      %c0_31 = arith.constant 0 : index
      %c0_32 = arith.constant 0 : index
      %c0_33 = arith.constant 0 : index
      %75 = vector.load %arg7[%c0_31, %c0_32, %c0_33] : memref<1x8x128xf32, #tpu.memory_space<vmem>>, vector<1x8x128xf32>
      %76 = vector.shape_cast %75 : vector<1x8x128xf32> to vector<8x128xf32>
      %77 = vector.shape_cast %74 : vector<8x128xf32> to vector<1x8x128xf32>
      tpu.vector_store %arg7[%c0_31, %c0_32, %c0_33], %77 {strides = array<i32>} : memref<1x8x128xf32, #tpu.memory_space<vmem>>, vector<1x8x128xf32>,
    } else {
    }
    return
  }
  func.func @transform_0(%arg0: i32, %arg1: i32) -> (i32, i32) {
    %c1_i32 = arith.constant 1 : i32
    %0 = arith.muli %arg0, %c1_i32 : i32
    %1 = arith.addi %0, %arg1 : i32
    %c0_i32 = arith.constant 0 : i32
    %2 = arith.minsi %1, %c0_i32 : i32
    %c0_i32_0 = arith.constant 0 : i32
    %c0_i32_1 = arith.constant 0 : i32
    return %2, %c0_i32_0 : i32, i32
  }
  func.func @transform_1(%arg0: i32, %arg1: i32) -> (i32, i32) {
    %c1_i32 = arith.constant 1 : i32
    %0 = arith.muli %arg0, %c1_i32 : i32
    %1 = arith.addi %0, %arg1 : i32
    %c0_i32 = arith.constant 0 : i32
    %2 = arith.minsi %1, %c0_i32 : i32
    %c0_i32_0 = arith.constant 0 : i32
    %c0_i32_1 = arith.constant 0 : i32
    return %2, %c0_i32_0 : i32, i32
  }
  func.func @transform_2(%arg0: i32, %arg1: i32) -> (i32, i32) {
    %c0_i32 = arith.constant 0 : i32
    %c0_i32_0 = arith.constant 0 : i32
    %c0_i32_1 = arith.constant 0 : i32
    return %c0_i32, %c0_i32_0 : i32, i32
  }
  func.func @transform_3(%arg0: i32, %arg1: i32) -> (i32, i32) {
    %c0_i32 = arith.constant 0 : i32
    %c0_i32_0 = arith.constant 0 : i32
    %c0_i32_1 = arith.constant 0 : i32
    return %c0_i32, %c0_i32_0 : i32, i32
  }
  func.func @transform_4(%arg0: i32, %arg1: i32) -> (i32, i32, i32) {
    %c0_i32 = arith.constant 0 : i32
    %c0_i32_0 = arith.constant 0 : i32
    %c0_i32_1 = arith.constant 0 : i32
    return %arg0, %c0_i32, %c0_i32_0 : i32, i32, i32
  }
  func.func @transform_5(%arg0: i32, %arg1: i32) -> (i32, i32, i32) {
    %c0_i32 = arith.constant 0 : i32
    %c0_i32_0 = arith.constant 0 : i32
    %c0_i32_1 = arith.constant 0 : i32
    return %arg0, %c0_i32, %c0_i32_0 : i32, i32, i32
  }
}

</mosaic_0001>

<bundles_post_ra>
// kernel: custom_loss.1
= control target key start
LH: loop header
LB: loop body
LE: loop exit
PB: predicated region body
PF: predicated region fallthrough
CT: control target
= control target key end

     0   :  { %v157_v0 = vlaneseq  ;;  %v237_v12 = vmov 0.0   ;;  %vm192_vm4 = vcmask 82944   ;;  %s292_s0 = inlined_call_operand.vmem [shape: f32[16,128], index: 0, kind: input, shape index: {}]   ;;  %s293_s1 = inlined_call_operand.vmem [shape: f32[16,128], index: 1, kind: input, shape index: {}]   ;;  %s294_s2 = inlined_call_operand.vmem [shape: f32[2,11], index: 2, kind: input, shape index: {}]   ;;  %s295_s3 = inlined_call_operand.vmem [shape: f32[2,11], index: 3, kind: input, shape index: {}]   ;;  %s296_s4 = inlined_call_operand.vmem [shape: f32[1,8,128], index: 4, kind: output, shape index: {0}]   ;;  %s297_s5 = inlined_call_operand.vmem [shape: f32[1,8,128], index: 5, kind: output, shape index: {1}]  }
   0x1   :  { %v91_v1 = vld [vmem:[%s292_s0] sm:$0xff]  ;;  %v92_v2 = vld [vmem:[%s292_s0 + $0x8] sm:$0xff] }
   0x2   :  { %v93_v3 = vld [vmem:[%s293_s1] sm:$0xff]  ;;  %v94_v4 = vld [vmem:[%s293_s1 + $0x8] sm:$0xff]  ;;  %v158_v7 = vand.u32 127, %v157_v0 }
   0x3   :  { %v95_v5 = vsub.f32 %v91_v1, %v93_v3  ;;  %v155_v6 = vld [vmem:[%s294_s2] sm:$0x3]  ;;  %v96_v8 = vsub.f32 %v92_v2, %v94_v4 }
   0x4   :  { %v172_v9 = vand.u32 2147483647, %v155_v6  ;;  %vm159_vm0 = vcmp.eq.s32.totalorder %v158_v7, 2  ;;  %vm161_vm1 = vcmp.eq.s32.totalorder %v158_v7, 6  ;;  %vm163_vm2 = vcmp.eq.s32.totalorder %v158_v7, 9 }
   0x5   :  { %v97_v10 = vmul.f32 %v95_v5, %v95_v5  ;;  %v98_v11 = vmul.f32 %v96_v8, %v96_v8  ;;  %v160_v13 = vsel %vm159_vm0, 0.01, %v237_v12  ;;  %v156_v20 = vld [vmem:[%s295_s3] sm:$0x3]  ;;  %v169_v28 = vmax.f32 %v155_v6, 0.0 }
   0x6   :  { %v173_v14 = vsub.f32 0.0, %v172_v9  ;;  %v162_v15 = vsel %vm161_vm1, 0.01, %v160_v13 }
   0x7   :  { %v138_v16 = vadd.f32 %v98_v11, %v97_v10  ;;  %v164_v17 = vsel %vm163_vm2, 0.01, %v162_v15 }
   0x8   :  { %v174_v18 = vmul.f32 1.442695, %v173_v14  ;;  %v165_v19 = vsub.f32 1.0, %v164_v17  ;;  %v167_v22 = vmul.f32 0.5, %v164_v17 }
   0x9   :  { %139 = vadd.xlane.f32.xlu0 %v138_v16 }
   0xa   :  { %231 = vpow2.f32 %v174_v18  ;;  %v166_v21 = vmul.f32 %v165_v19, %v156_v20 }
   0xc   :  { %v168_v24 = vadd.f32 %v167_v22, %v166_v21 }
   0xe   :  { %v170_v29 = vmul.f32 %v168_v24, %v155_v6 }
  0x10   :  { %v232_v23 = vpop.eup %231  ;;  %v171_v33 = vsub.f32 %v169_v28, %v170_v29 }
  0x11   :  { %v176_v25 = vadd.f32 1.0, %v232_v23  ;;  %v179_v26 = vmul.f32 -0.5, %v232_v23  ;;  %v182_v30 = vand.u32 2147483647, %v232_v23 }
  0x13   :  { %233 = vlog2.f32 %v176_v25  ;;  %v180_v27 = vadd.f32 1.0, %v179_v26  ;;  %vm183_vm3 = vcmp.lt.f32.partialorder %v182_v30, 0.0004427343 }
  0x15   :  { %v181_v31 = vmul.f32 %v232_v23, %v180_v27 }
  0x19   :  { %v234_v32 = vpop.eup %233 }
  0x1a   :  { %v178_v34 = vmul.f32 0.6931472, %v234_v32 }
  0x1c   :  { %v184_v35 = vsel %vm183_vm3, %v181_v31, %v178_v34 }
  0x1d   :  { %v185_v36 = vadd.f32 %v184_v35, %v171_v33 }
  0x1f   :  { %v186_v37 = vsub.f32 0.0, %v185_v36 }
  0x21   :  { %v187_v38 = vmul.f32 1.442695, %v186_v37 }
  0x23   :  { %235 = vpow2.f32 %v187_v38 }
  0x29   :  { %v236_v39 = vpop.eup %235 }
  0x2a   :  { %v189_v40 = vsub.f32 1.0, %v236_v39 }
  0x2c   :  { %v190_v41 = vmul.f32 %v189_v40, %v189_v40 }
  0x2e   :  { %v191_v42 = vmul.f32 %v190_v41, %v185_v36 }
  0x30   :  { %v193_v43 = vsel %vm192_vm4, %v191_v42, 0.0 }
  0x31   :  { %194 = vadd.xlane.f32.xlu0 %v193_v43 }
  0x7c   :  { %v140_v44 = vpop.xlane.xlu0 %139 }
  0x7d   :  { %v141_v45 = vrot.slane %v140_v44, 4 }
  0x7f   :  { %v142_v46 = vadd.f32 %v141_v45, %v140_v44 }
  0x81   :  { %v143_v47 = vrot.slane %v142_v46, 2 }
  0x83   :  { %v144_v48 = vadd.f32 %v143_v47, %v142_v46 }
  0x85   :  { %v145_v49 = vrot.slane %v144_v48, 1 }
  0x87   :  { %v146_v50 = vadd.f32 %v145_v49, %v144_v48 }
  0x89   :  { %226 = vpush %v146_v50 }
  0xa4   :  { %v195_v51 = vpop.xlane.xlu0 %194 }
  0xa5   :  { %v196_v52 = vrot.slane %v195_v51, 4 }
  0xa7   :  { %v197_v53 = vadd.f32 %v196_v52, %v195_v51 }
  0xa9   :  { %v198_v54 = vrot.slane %v197_v53, 2 }
  0xab   :  { %v199_v55 = vadd.f32 %v198_v54, %v197_v53 }
  0xad   :  { %v200_v56 = vrot.slane %v199_v55, 1 }
  0xaf   :  { %v201_v57 = vadd.f32 %v200_v56, %v199_v55 }
  0xb1   :  { %228 = vpush %v201_v57 }
  0xba   :  { %s227_s2 = spop %226 }
  0xbb   :  { %v148_v58 = vstv %s227_s2 }
  0xbc   :  { %149 = vst [vmem:[%s296_s4] sm:$0xff] %v148_v58 }
  0xe2   :  { %s229_s29 = spop %228 }
  0xe3   :  { %s203_s30 = smul.f32 0.045454547, %s229_s29 }
  0xe5   :  { %v204_v59 = vstv %s203_s30 }
  0xe6   :  { %205 = vst [vmem:[%s297_s5] sm:$0xff] %v204_v59 }

</bundles_post_ra>
